<compile_context>
chip_gen: v7x
topology: tpu7x:2x2x1
jax: 0.10.0
libtpu: 0.0.40
codegen_flags: <defaults>
</compile_context>

<pallas_src>
import jax
import jax.numpy as jnp
from jax.experimental import pallas as pl
from jax.experimental.pallas import tpu as pltpu

_LANE = 128
_MIB = 1024 * 1024


def _round_up(x, m):
    return ((x + m - 1) // m) * m


def _cdiv(a, b):
    return -(-a // b)


# ----------------------------------------------------------------------------- kernel
def fcs_kernel(x_ref, w1_ref, b1_ref, w2_ref, b2_ref, w3_ref, b3_ref, o_ref):
    cdt = w1_ref.dtype
    # In-kernel cast of the input tile (instead of a separate XLA cast over all of x).
    x = x_ref[...].astype(cdt)
    # Layer 1: Linear(in_ch -> h_ch) + ReLU.  bf16 MXU operands, f32 accumulate.
    h1 = jnp.dot(x, w1_ref[...], preferred_element_type=jnp.float32)
    h1 = jnp.maximum(h1 + b1_ref[...], 0.0)
    # Layer 2: Linear(h_ch -> 100(padded 128)) + ReLU
    h2 = jnp.dot(h1.astype(cdt), w2_ref[...], preferred_element_type=jnp.float32)
    h2 = jnp.maximum(h2 + b2_ref[...], 0.0)
    # Layer 3: Linear(100 -> out_ch), no activation; output axis is unpadded.
    o = jnp.dot(h2.astype(cdt), w3_ref[...], preferred_element_type=jnp.float32)
    o_ref[...] = (o + b3_ref[...]).astype(o_ref.dtype)


# ------------------------------------------------------------------- hardware profile
def _tpu_memory_profile():
    """(vmem_budget_bytes, vmem_limit_bytes, num_tensorcores) for this generation."""
    vmem_cap = None
    try:
        vmem_cap = int(pltpu.get_tpu_info().vmem_capacity_bytes)
    except Exception:
        vmem_cap = None
    if vmem_cap is None:
        vmem_cap = 64 * _MIB  # conservative: assume the smallest-VMEM target (v7x)
    if vmem_cap <= 64 * _MIB:
        # v7x: 64 MiB VMEM per TensorCore, 2 TensorCores per chip.
        return 44 * _MIB, 48 * _MIB, 2
    # v5e / v6e: 128 MiB VMEM, single TensorCore.
    return 96 * _MIB, 100 * _MIB, 1


def _weight_block_kwargs():
    """Narrow feature probe for BlockSpec(..., pipeline_mode=pl.Buffered(1)).

    Only AttributeError / TypeError from an unsupported kwarg are swallowed;
    genuine compile/lowering errors propagate."""
    try:
        buffered = pl.Buffered(1)
        pl.BlockSpec((8, 128), lambda i: (0, 0), pipeline_mode=buffered)
        return {"pipeline_mode": buffered}
    except (AttributeError, TypeError):
        return {}


# ---------------------------------------------------------------------- tile selection
def _pick_tile_b(B, compute_dtype, in_dtype, out_dtype, in_ch, h_p, mid_p, out_n,
                 single_buffered_weights, vmem_budget_bytes, num_tc):
    """Largest sublane-aligned batch tile whose estimated VMEM footprint fits the
    generation-aware budget; on 2-TC chips prefer an even number of grid steps."""
    sub = 16  # safe alignment for both f32 (8) and bf16 (16) sublane packing
    cbytes = jnp.dtype(compute_dtype).itemsize
    xbytes = jnp.dtype(in_dtype).itemsize
    obytes = jnp.dtype(out_dtype).itemsize
    w_mult = 1 if single_buffered_weights else 2

    def footprint(tb):
        weights = w_mult * (in_ch * h_p + h_p * mid_p + mid_p * out_n) * cbytes
        biases = w_mult * (h_p + mid_p + out_n) * 4
        x_blk = 2 * tb * in_ch * xbytes           # double-buffered input tile
        x_cast = tb * in_ch * cbytes              # in-kernel bf16 copy of x
        o_blk = 2 * tb * out_n * obytes           # double-buffered output tile
        interm = tb * (h_p + mid_p) * 4           # f32 h1 / h2
        interm += tb * (h_p + mid_p) * cbytes     # bf16 copies fed back to the MXU
        total = weights + biases + x_blk + x_cast + o_blk + interm
        return int(total * 1.25)                  # regalloc / compiler-scratch headroom

    b_aligned = _round_up(B, sub)
    tb = _round_up(min(8192, b_aligned), sub)
    while tb > sub and footprint(tb) > vmem_budget_bytes:
        tb = max(sub, _round_up(tb // 2, sub))

    if num_tc > 1 and B > sub:
        steps = _cdiv(B, tb)
        if steps == 1:
            # Split so both TensorCores get work (only on multi-TC chips).
            tb = max(sub, _round_up(_cdiv(B, 2), sub))
        elif steps % 2 == 1:
            # Balance: avoid an odd trailing step that idles one TensorCore.
            tb = max(sub, _round_up(_cdiv(B, steps + 1), sub))
    return tb


# --------------------------------------------------------------------------- forward
def fcs_forward(x, params, *, tile_b=None):
    """Run the 3-layer MLP.  x: (B, in_ch) in any float dtype."""
    w1, b1, w2, b2, w3, b3 = (params["w1"], params["b1"], params["w2"],
                              params["b2"], params["w3"], params["b3"])
    compute_dtype = w1.dtype
    out_dtype = x.dtype
    B, in_ch = x.shape
    h_p = w1.shape[1]
    mid_p = w2.shape[1]
    out_ch = w3.shape[1]          # unpadded output width

    vmem_budget, vmem_limit, num_tc = _tpu_memory_profile()
    wkw = _weight_block_kwargs()
    if tile_b is None:
        tile_b = _pick_tile_b(B, compute_dtype, x.dtype, out_dtype, in_ch, h_p,
                              mid_p, out_ch, bool(wkw), vmem_budget, num_tc)

    grid = (pl.cdiv(B, tile_b),)

    flops = 2 * B * (in_ch * h_p + h_p * mid_p + mid_p * out_ch)
    bytes_accessed = (int(x.size) * x.dtype.itemsize
                      + sum(int(a.size) * a.dtype.itemsize
                            for a in (w1, b1, w2, b2, w3, b3))
                      + B * out_ch * jnp.dtype(out_dtype).itemsize)
    cost = pl.CostEstimate(flops=flops, transcendentals=0,
                           bytes_accessed=bytes_accessed)

    fn = pl.pallas_call(
        fcs_kernel,
        out_shape=jax.ShapeDtypeStruct((B, out_ch), out_dtype),
        grid_spec=pltpu.PrefetchScalarGridSpec(
            num_scalar_prefetch=0,
            grid=grid,
            in_specs=[
                pl.BlockSpec((tile_b, in_ch), lambda i: (i, 0)),
                # Grid-invariant weights/biases: single-buffered when supported.
                pl.BlockSpec((in_ch, h_p), lambda i: (0, 0), **wkw),
                pl.BlockSpec((1, h_p), lambda i: (0, 0), **wkw),
                pl.BlockSpec((h_p, mid_p), lambda i: (0, 0), **wkw),
                pl.BlockSpec((1, mid_p), lambda i: (0, 0), **wkw),
                pl.BlockSpec((mid_p, out_ch), lambda i: (0, 0), **wkw),
                pl.BlockSpec((1, out_ch), lambda i: (0, 0), **wkw),
            ],
            out_specs=pl.BlockSpec((tile_b, out_ch), lambda i: (i, 0)),
        ),
        compiler_params=pltpu.CompilerParams(
            dimension_semantics=("parallel",),   # batch axis, megacore-shardable
            vmem_limit_bytes=vmem_limit,         # generation-aware (48 / 100 MiB)
        ),
        cost_estimate=cost,
    )
    return fn(x, w1, b1, w2, b2, w3, b3)


# ----------------------------------------------------------------------------- params
def init_fcs_params(key, in_ch, out_ch, h_ch=1000, *, dtype=jnp.bfloat16):
    """Parameters matching PyTorch nn.Linear init U(-1/sqrt(fan_in), 1/sqrt(fan_in)).
    Weights stored transposed ((in_features, out_features)) in `dtype`, biases f32.
    Hidden and mid(100) axes are zero-padded to lane multiples (exact through ReLU);
    in_ch and out_ch are intentionally NOT padded."""
    mid = 100
    h_p = _round_up(h_ch, _LANE)
    mid_p = _round_up(mid, _LANE)     # 100 -> 128

    ks = jax.random.split(key, 6)

    def lin(kw, kb, fan_in, fan_out, pad_in, pad_out):
        bound = 1.0 / (fan_in ** 0.5)
        w = jax.random.uniform(kw, (fan_in, fan_out), jnp.float32, -bound, bound)
        b = jax.random.uniform(kb, (1, fan_out), jnp.float32, -bound, bound)
        w = jnp.pad(w, ((0, pad_in - fan_in), (0, pad_out - fan_out)))
        b = jnp.pad(b, ((0, 0), (0, pad_out - fan_out)))
        return w.astype(dtype), b     # weights in compute dtype, bias stays f32

    w1, b1 = lin(ks[0], ks[1], in_ch, h_ch, in_ch, h_p)
    w2, b2 = lin(ks[2], ks[3], h_ch, mid, h_p, mid_p)
    w3, b3 = lin(ks[4], ks[5], mid, out_ch, mid_p, out_ch)   # out axis unpadded
    return {"w1": w1, "b1": b1, "w2": w2, "b2": b2, "w3": w3, "b3": b3,
            "out_ch": out_ch}


# -------------------------------------------------------------------------- reference
def fcs_reference(x, params):
    """Pure-JAX reference applying the same dtype casts as the kernel."""
    cdt = params["w1"].dtype
    f32 = jnp.float32
    h = x.astype(cdt).astype(f32) @ params["w1"].astype(f32) + params["b1"]
    h = jnp.maximum(h, 0.0)
    h = h.astype(cdt).astype(f32) @ params["w2"].astype(f32) + params["b2"]
    h = jnp.maximum(h, 0.0)
    o = h.astype(cdt).astype(f32) @ params["w3"].astype(f32) + params["b3"]
    return o.astype(x.dtype)


if __name__ == "__main__":
    key = jax.random.PRNGKey(0)
    k_param, k_x = jax.random.split(key)

    # Small shapes consistent with FCs(in_ch, out_ch, h_ch): 3-layer MLP on (B, in_ch).
    B, in_ch, out_ch, h_ch = 256, 32, 16, 128
    params = init_fcs_params(k_param, in_ch, out_ch, h_ch=h_ch, dtype=jnp.bfloat16)
    x = jax.random.normal(k_x, (B, in_ch), jnp.float32)

    out = fcs_forward(x, params)
    out = jax.block_until_ready(out)

    ref = fcs_reference(x, params)
    assert out.shape == (B, out_ch), out.shape
    assert out.dtype == x.dtype, out.dtype
    max_err = float(jnp.max(jnp.abs(out - ref)))
    # bf16 operands -> allow ~1e-2-level differences vs the f32-accumulated reference.
    assert jnp.allclose(out, ref, atol=2e-2, rtol=2e-2), f"mismatch vs reference: {max_err}"
    print("KERNEL_OK")
</pallas_src>

<mosaic_0001>
module attributes {stable_mosaic.version = 11 : i64} {
  func.func @fcs_kernel(%arg0: i32, %arg1: memref<128x32xf32, #tpu.memory_space<vmem>>, %arg2: memref<32x128xbf16, #tpu.memory_space<vmem>>, %arg3: memref<1x128xf32, #tpu.memory_space<vmem>>, %arg4: memref<128x128xbf16, #tpu.memory_space<vmem>>, %arg5: memref<1x128xf32, #tpu.memory_space<vmem>>, %arg6: memref<128x16xbf16, #tpu.memory_space<vmem>>, %arg7: memref<1x16xf32, #tpu.memory_space<vmem>>, %arg8: memref<128x16xf32, #tpu.memory_space<vmem>>) attributes {dimension_semantics = [#tpu.dimension_semantics<parallel>], iteration_bounds = array<i64: 2>, scalar_prefetch = 0 : i64, scratch_operands = 0 : i64, tpu.core_type = #tpu.core_type<tc>, window_params = [{transform_indices = @transform_0, window_bounds = array<i64: 128, 32>}, {pipeline_mode = #tpu.pipeline_mode<synchronous>, transform_indices = @transform_1, window_bounds = array<i64: 32, 128>}, {pipeline_mode = #tpu.pipeline_mode<synchronous>, transform_indices = @transform_2, window_bounds = array<i64: 1, 128>}, {pipeline_mode = #tpu.pipeline_mode<synchronous>, transform_indices = @transform_3, window_bounds = array<i64: 128, 128>}, {pipeline_mode = #tpu.pipeline_mode<synchronous>, transform_indices = @transform_4, window_bounds = array<i64: 1, 128>}, {pipeline_mode = #tpu.pipeline_mode<synchronous>, transform_indices = @transform_5, window_bounds = array<i64: 128, 16>}, {pipeline_mode = #tpu.pipeline_mode<synchronous>, transform_indices = @transform_6, window_bounds = array<i64: 1, 16>}, {transform_indices = @transform_7, window_bounds = array<i64: 128, 16>}]} {
    %c0 = arith.constant 0 : index
    %c0_0 = arith.constant 0 : index
    %0 = vector.load %arg1[%c0, %c0_0] : memref<128x32xf32, #tpu.memory_space<vmem>>, vector<128x32xf32>
    %1 = arith.truncf %0 : vector<128x32xf32> to vector<128x32xbf16>
    %c0_1 = arith.constant 0 : index
    %c0_2 = arith.constant 0 : index
    %2 = vector.load %arg2[%c0_1, %c0_2] : memref<32x128xbf16, #tpu.memory_space<vmem>>, vector<32x128xbf16>
    %cst = arith.constant dense<0.000000e+00> : vector<128x128xf32>
    %3 = tpu.matmul %1, %2, %cst {dimension_numbers = #tpu.dot_dimension_numbers<[1], [0], [0], [1], [0, 0, 1, 1], [], []>} : vector<128x32xbf16>, vector<32x128xbf16>, vector<128x128xf32> -> vector<128x128xf32>
    %c0_3 = arith.constant 0 : index
    %c0_4 = arith.constant 0 : index
    %4 = vector.load %arg3[%c0_3, %c0_4] : memref<1x128xf32, #tpu.memory_space<vmem>>, vector<1x128xf32>
    %5 = vector.broadcast %4 : vector<1x128xf32> to vector<128x128xf32>
    %6 = arith.addf %3, %5 : vector<128x128xf32>
    %cst_5 = arith.constant 0.000000e+00 : f32
    %7 = vector.broadcast %cst_5 : f32 to vector<128x128xf32>
    %8 = arith.maximumf %6, %7 : vector<128x128xf32>
    %9 = arith.truncf %8 : vector<128x128xf32> to vector<128x128xbf16>
    %c0_6 = arith.constant 0 : index
    %c0_7 = arith.constant 0 : index
    %10 = vector.load %arg4[%c0_6, %c0_7] : memref<128x128xbf16, #tpu.memory_space<vmem>>, vector<128x128xbf16>
    %cst_8 = arith.constant dense<0.000000e+00> : vector<128x128xf32>
    %11 = tpu.matmul %9, %10, %cst_8 {dimension_numbers = #tpu.dot_dimension_numbers<[1], [0], [0], [1], [0, 0, 1, 1], [], []>} : vector<128x128xbf16>, vector<128x128xbf16>, vector<128x128xf32> -> vector<128x128xf32>
    %c0_9 = arith.constant 0 : index
    %c0_10 = arith.constant 0 : index
    %12 = vector.load %arg5[%c0_9, %c0_10] : memref<1x128xf32, #tpu.memory_space<vmem>>, vector<1x128xf32>
    %13 = vector.broadcast %12 : vector<1x128xf32> to vector<128x128xf32>
    %14 = arith.addf %11, %13 : vector<128x128xf32>
    %cst_11 = arith.constant 0.000000e+00 : f32
    %15 = vector.broadcast %cst_11 : f32 to vector<128x128xf32>
    %16 = arith.maximumf %14, %15 : vector<128x128xf32>
    %17 = arith.truncf %16 : vector<128x128xf32> to vector<128x128xbf16>
    %c0_12 = arith.constant 0 : index
    %c0_13 = arith.constant 0 : index
    %18 = vector.load %arg6[%c0_12, %c0_13] : memref<128x16xbf16, #tpu.memory_space<vmem>>, vector<128x16xbf16>
    %cst_14 = arith.constant dense<0.000000e+00> : vector<128x16xf32>
    %19 = tpu.matmul %17, %18, %cst_14 {dimension_numbers = #tpu.dot_dimension_numbers<[1], [0], [0], [1], [0, 0, 1, 1], [], []>} : vector<128x128xbf16>, vector<128x16xbf16>, vector<128x16xf32> -> vector<128x16xf32>
    %c0_15 = arith.constant 0 : index
    %c0_16 = arith.constant 0 : index
    %20 = vector.load %arg7[%c0_15, %c0_16] : memref<1x16xf32, #tpu.memory_space<vmem>>, vector<1x16xf32>
    %21 = vector.broadcast %20 : vector<1x16xf32> to vector<128x16xf32>
    %22 = arith.addf %19, %21 : vector<128x16xf32>
    %c0_17 = arith.constant 0 : index
    %c0_18 = arith.constant 0 : index
    %23 = vector.load %arg8[%c0_17, %c0_18] : memref<128x16xf32, #tpu.memory_space<vmem>>, vector<128x16xf32>
    tpu.vector_store %arg8[%c0_17, %c0_18], %22 {strides = array<i32>} : memref<128x16xf32, #tpu.memory_space<vmem>>, vector<128x16xf32>,
    return
  }
  func.func @transform_0(%arg0: i32) -> (i32, i32) {
    %c0_i32 = arith.constant 0 : i32
    %c0_i32_0 = arith.constant 0 : i32
    return %arg0, %c0_i32 : i32, i32
  }
  func.func @transform_1(%arg0: i32) -> (i32, i32) {
    %c0_i32 = arith.constant 0 : i32
    %c0_i32_0 = arith.constant 0 : i32
    %c0_i32_1 = arith.constant 0 : i32
    return %c0_i32, %c0_i32_0 : i32, i32
  }
  func.func @transform_2(%arg0: i32) -> (i32, i32) {
    %c0_i32 = arith.constant 0 : i32
    %c0_i32_0 = arith.constant 0 : i32
    %c0_i32_1 = arith.constant 0 : i32
    return %c0_i32, %c0_i32_0 : i32, i32
  }
  func.func @transform_3(%arg0: i32) -> (i32, i32) {
    %c0_i32 = arith.constant 0 : i32
    %c0_i32_0 = arith.constant 0 : i32
    %c0_i32_1 = arith.constant 0 : i32
    return %c0_i32, %c0_i32_0 : i32, i32
  }
  func.func @transform_4(%arg0: i32) -> (i32, i32) {
    %c0_i32 = arith.constant 0 : i32
    %c0_i32_0 = arith.constant 0 : i32
    %c0_i32_1 = arith.constant 0 : i32
    return %c0_i32, %c0_i32_0 : i32, i32
  }
  func.func @transform_5(%arg0: i32) -> (i32, i32) {
    %c0_i32 = arith.constant 0 : i32
    %c0_i32_0 = arith.constant 0 : i32
    %c0_i32_1 = arith.constant 0 : i32
    return %c0_i32, %c0_i32_0 : i32, i32
  }
  func.func @transform_6(%arg0: i32) -> (i32, i32) {
    %c0_i32 = arith.constant 0 : i32
    %c0_i32_0 = arith.constant 0 : i32
    %c0_i32_1 = arith.constant 0 : i32
    return %c0_i32, %c0_i32_0 : i32, i32
  }
  func.func @transform_7(%arg0: i32) -> (i32, i32) {
    %c0_i32 = arith.constant 0 : i32
    %c0_i32_0 = arith.constant 0 : i32
    return %arg0, %c0_i32 : i32, i32
  }
}

</mosaic_0001>

<bundles_post_ra>
// kernel: tpu_custom_call.1
= control target key start
LH: loop header
LB: loop body
LE: loop exit
PB: predicated region body
PF: predicated region fallthrough
CT: control target
= control target key end

     0   :  { %s1149_s24 = smov 0   ;;  %s1296_s0 = inlined_call_operand.vmem [shape: f32[256,32], index: 0, kind: input, shape index: {}]   ;;  %s1297_s1 = inlined_call_operand.vmem [shape: bf16[32,128], index: 1, kind: input, shape index: {}]   ;;  %s1298_s2 = inlined_call_operand.vmem [shape: f32[1,128], index: 2, kind: input, shape index: {}]   ;;  %s1299_s3 = inlined_call_operand.vmem [shape: bf16[128,128], index: 3, kind: input, shape index: {}]   ;;  %s1300_s4 = inlined_call_operand.vmem [shape: f32[1,128], index: 4, kind: input, shape index: {}]   ;;  %s1301_s5 = inlined_call_operand.vmem [shape: bf16[128,16], index: 5, kind: input, shape index: {}]   ;;  %s1302_s6 = inlined_call_operand.vmem [shape: f32[1,16], index: 6, kind: input, shape index: {}]   ;;  %s1303_s7 = inlined_call_operand.vmem [shape: f32[256,16], index: 7, kind: output, shape index: {}]  }
   0x1 LB: > { %s909_s25 = sadd.s32 4294967295, %s1107_s24   ;;  %p913_p0 = scmp.ge.s32.totalorder %s1107_s24, 1  ;;  %s1107_s24 = sphi %s1149_s24, %s17_s24  }
   0x2   : > { %p238_p1 = scmp.lt.s32.totalorder %s1107_s24, 3 }
   0x4   : > { %p239_p2 = pnand %p913_p0, %p238_p1 }
   0x5   : > { %v1083_v0 = vld [vmem:[%s1297_s1] sm:$0xff] (!%p239_p2)   ;;  %s914_s28 = sshll.u32 (!%p239_p2), %s909_s25, 4  ;;  %v1084_v1 = vld [vmem:[%s1297_s1 + $0x8] sm:$0xff] (!%p239_p2)   ;;  %v1087_v4 = vld [vmem:[%s1299_s3 + $0x10] sm:$0xff] (!%p239_p2)   ;;  %vm330_vm0 = vcmask (!%p239_p2), 261120   ;;  %vm836_vm1 = vcmask (!%p239_p2), 130048  }
   0x6   : > { %242 = sbr.rel (%p239_p2) target bundleno = 706 (0x2c2), region = 48  ;;  %p271_p3 = scmp.lt.s32.totalorder (!%p239_p2), %s914_s28, 31  ;;  %991 = vmatprep.subr.bf16.mxu0 (!%p239_p2), %v1083_v0  ;;  %v1085_v2 = vld [vmem:[%s1299_s3] sm:$0xff] (!%p239_p2)   ;;  %v1086_v3 = vld [vmem:[%s1299_s3 + $0x8] sm:$0xff] (!%p239_p2)   ;;  %v1088_v14 = vld [vmem:[%s1299_s3 + $0x18] sm:$0xff] (!%p239_p2)  }
   0x7   : > { %992 = vmatpush3.bf16.msra.mxu0 (!%p239_p2), %v1083_v0  ;;  %1011 = vmatprep.subr.bf16.mxu1 (!%p239_p2), %v1085_v2  ;;  %v1089_v18 = vld [vmem:[%s1299_s3 + $0x20] sm:$0xff] (!%p239_p2)   ;;  %v1090_v22 = vld [vmem:[%s1299_s3 + $0x28] sm:$0xff] (!%p239_p2)   ;;  %v1091_v32 = vld [vmem:[%s1299_s3 + $0x30] sm:$0xff] (!%p239_p2)  }
   0x8   : > { %993 = vmatprep.subr.bf16.mxu0 (!%p239_p2), %v1084_v1  ;;  %1012 = vmatpush3.bf16.msra.mxu1 (!%p239_p2), %v1085_v2  ;;  %v1092_v33 = vld [vmem:[%s1299_s3 + $0x38] sm:$0xff] (!%p239_p2)   ;;  %v1093_v34 = vld [vmem:[%s1301_s5] sm:$0xff] (!%p239_p2)   ;;  %v1094_v35 = vld [vmem:[%s1301_s5 + $0x8] sm:$0xff] (!%p239_p2)  }
   0x9   : > { %1013 = vmatprep.subr.bf16.mxu1 (!%p239_p2), %v1086_v3  ;;  %v1095_v36 = vld [vmem:[%s1301_s5 + $0x10] sm:$0xff] (!%p239_p2)   ;;  %v1096_v37 = vld [vmem:[%s1301_s5 + $0x18] sm:$0xff] (!%p239_p2)   ;;  %v1097_v38 = vld [vmem:[%s1301_s5 + $0x20] sm:$0xff] (!%p239_p2)  }
   0xa   : > { %v1098_v39 = vld [vmem:[%s1301_s5 + $0x28] sm:$0xff] (!%p239_p2)   ;;  %v918_v40 = vld [vmem:[%s1298_s2] ss:$0 sm:$0xff] (!%p239_p2) }
   0xb   : > { %994 = vmatpush3.bf16.msra.mxu0 (!%p239_p2), %v1084_v1 }
   0xc   : > { %1014 = vmatpush3.bf16.msra.mxu1 (!%p239_p2), %v1086_v3  ;;  %1043 = vmatprep.subr.bf16.mxu0 (!%p239_p2), %v1093_v34 }
   0xd   : > { %s1305_s28 = smov (!%p271_p3, %s914_s28), 31  ;;  %1015 = vmatprep.subr.bf16.mxu1 %v1087_v4 }
   0xe   : > { %s915_s12 = sshll.u32 %s1305_s28, 3 }
   0xf   : > { %s1177_s15 = scalar_lea.vmem %s1296_s0, %s915_s12  ;;  %s1259_s11 = scalar_lea.vmem %s1303_s7, %s915_s12 }
  0x10   : > { %v283_v5 = vld [vmem:[%s1177_s15] sm:$0xff]  ;;  %v284_v6 = vld [vmem:[%s1177_s15 + $0x8] sm:$0xff]  ;;  %v285_v7 = vld [vmem:[%s1177_s15 + $0x10] sm:$0xff]  ;;  %1016 = vmatpush3.bf16.msra.mxu1 %v1087_v4 }
  0x11   : > { %v299_v8 = vpack.c.bf16 %v284_v6, %v283_v5  ;;  %v286_v9 = vld [vmem:[%s1177_s15 + $0x18] sm:$0xff]  ;;  %v287_v10 = vld [vmem:[%s1177_s15 + $0x20] sm:$0xff]  ;;  %v288_v11 = vld [vmem:[%s1177_s15 + $0x28] sm:$0xff]  ;;  %1017 = vmatprep.subr.bf16.mxu1 %v1088_v14 }
  0x12   : > { %v300_v12 = vpack.c.bf16 %v286_v9, %v285_v7  ;;  %v301_v13 = vpack.c.bf16 %v288_v11, %v287_v10  ;;  %v289_v15 = vld [vmem:[%s1177_s15 + $0x30] sm:$0xff]  ;;  %v290_v16 = vld [vmem:[%s1177_s15 + $0x38] sm:$0xff]  ;;  %v291_v17 = vld [vmem:[%s1177_s15 + $0x40] sm:$0xff] }
  0x13   : > { %995 = vmatprep.mubr.msk.bf16.mxu0 %vm330_vm0, %v299_v8  ;;  %v292_v19 = vld [vmem:[%s1177_s15 + $0x48] sm:$0xff]  ;;  %v302_v20 = vpack.c.bf16 %v290_v16, %v289_v15  ;;  %v293_v23 = vld [vmem:[%s1177_s15 + $0x50] sm:$0xff]  ;;  %v294_v24 = vld [vmem:[%s1177_s15 + $0x58] sm:$0xff] }
  0x14   : > { %996 = vmatmul.mubr.msk.bf16.vlgmr.msra.gmra.mrb[0].mxu0 %vm330_vm0, %v300_v12  ;;  %v303_v21 = vpack.c.bf16 %v292_v19, %v291_v17  ;;  %1018 = vmatpush3.bf16.msra.mxu1 %v1088_v14  ;;  %v295_v25 = vld [vmem:[%s1177_s15 + $0x60] sm:$0xff]  ;;  %v296_v26 = vld [vmem:[%s1177_s15 + $0x68] sm:$0xff]  ;;  %v304_v27 = vpack.c.bf16 %v294_v24, %v293_v23  ;;  %v297_v29 = vld [vmem:[%s1177_s15 + $0x70] sm:$0xff] }
  0x15   : > { %999 = vmatprep.mubr.msk.bf16.mxu0 %vm330_vm0, %v301_v13  ;;  %1019 = vmatprep.subr.bf16.mxu1 %v1089_v18  ;;  %v305_v28 = vpack.c.bf16 %v296_v26, %v295_v25  ;;  %v298_v30 = vld [vmem:[%s1177_s15 + $0x78] sm:$0xff] }
  0x16   : > { %v306_v31 = vpack.c.bf16 %v298_v30, %v297_v29  ;;  %1044 = vmatpush3.bf16.msra.mxu0 %v1093_v34  ;;  %v1100_v34 = vld [vmem:[%s1301_s5 + $0x38] sm:$0xff]  }
  0x17   : > { %1045 = vmatprep.subr.bf16.mxu0 %v1094_v35 }
  0x18   : > { %1020 = vmatpush3.bf16.msra.mxu1 %v1089_v18 }
  0x19   : > { %1021 = vmatprep.subr.bf16.mxu1 %v1090_v22 }
  0x1a   : > { %1046 = vmatpush3.bf16.msra.mxu0 %v1094_v35  ;;  %v929_v35 = vld [vmem:[%s1300_s4] ss:$0 sm:$0xff] }
  0x1b   : > { %1047 = vmatprep.subr.bf16.mxu0 %v1095_v36 }
  0x1c   : > { %1000 = vmatmul.mubr.msk.bf16.gmra.mrb[4].mxu0 %vm330_vm0, %v302_v20  ;;  %1022 = vmatpush3.bf16.msra.mxu1 %v1090_v22 }
  0x1d   : > { %1003 = vmatprep.mubr.msk.bf16.mxu0 %vm330_vm0, %v303_v21  ;;  %1023 = vmatprep.subr.bf16.mxu1 %v1091_v32 }
  0x1e   : > { %1048 = vmatpush3.bf16.msra.mxu0 %v1095_v36 }
  0x1f   : > { %1049 = vmatprep.subr.bf16.mxu0 %v1096_v37 }
  0x20   : > { %1024 = vmatpush3.bf16.msra.mxu1 %v1091_v32 }
  0x21   : > { %1025 = vmatprep.subr.bf16.mxu1 %v1092_v33 }
  0x22   : > { %1050 = vmatpush3.bf16.msra.mxu0 %v1096_v37 }
  0x23   : > { %1051 = vmatprep.subr.bf16.mxu0 %v1097_v38 }
  0x24   : > { %1004 = vmatmul.mubr.msk.bf16.gmra.mrb[8].mxu0 %vm330_vm0, %v304_v27  ;;  %1026 = vmatpush3.bf16.msra.mxu1 %v1092_v33  ;;  %v1099_v33 = vld [vmem:[%s1301_s5 + $0x30] sm:$0xff]  }
  0x25   : > { %1007 = vmatprep.mubr.msk.bf16.mxu0 %vm330_vm0, %v305_v28 }
  0x26   : > { %1052 = vmatpush3.bf16.msra.mxu0 %v1097_v38 }
  0x27   : > { %1053 = vmatprep.subr.bf16.mxu0 %v1098_v39 }
  0x2a   : > { %1054 = vmatpush3.bf16.msra.mxu0 %v1098_v39 }
  0x2b   : > { %1055 = vmatprep.subr.bf16.mxu0 %v1099_v33 }
  0x2c   : > { %1008 = vmatmul.mubr.msk.bf16.gmra.mrb[12].mxu0 %vm330_vm0, %v306_v31 }
  0x2e   : > { %1056 = vmatpush3.bf16.msra.mxu0 %v1099_v33 }
  0x2f   : > { %1057 = vmatprep.subr.bf16.mxu0 %v1100_v34 }
  0x32   : > { %1058 = vmatpush3.bf16.msra.mxu0 %v1100_v34 }
  0xe7   : > { %v997_v41 = vpop.f32.mrb[0].mxu0 }
  0xe8   : > { %v398_v42 = vadd.f32 %v997_v41, %v918_v40  ;;  %v389_v43 = vpop.f32.mrb[1].mxu0 }
  0xe9   : > { %v390_v44 = vadd.f32 %v918_v40, %v389_v43  ;;  %v998_v45 = vpop.f32.mrb[2].mxu0 }
  0xea   : > { %v401_v46 = vadd.f32 %v998_v45, %v918_v40  ;;  %v392_v47 = vpop.f32.mrb[3].mxu0  ;;  %v454_v49 = vmax.f32 %v398_v42, 0.0 }
  0xeb   : > { %v393_v48 = vadd.f32 %v918_v40, %v392_v47  ;;  %v452_v51 = vmax.f32 %v390_v44, 0.0 }
  0xec   : > { %v455_v50 = vmax.f32 %v401_v46, 0.0 }
  0xed   : > { %v453_v52 = vmax.f32 %v393_v48, 0.0 }
  0xee   : > { %v469_v53 = vpack.c.bf16 %v455_v50, %v454_v49 }
  0xef   : > { %v1001_v54 = vpop.f32.mrb[4].mxu0  ;;  %v468_v55 = vpack.c.bf16 %v453_v52, %v452_v51 }
  0xf0   : > { %v414_v56 = vadd.f32 %v1001_v54, %v918_v40  ;;  %v405_v57 = vpop.f32.mrb[5].mxu0 }
  0xf1   : > { %v406_v58 = vadd.f32 %v918_v40, %v405_v57  ;;  %v1002_v59 = vpop.f32.mrb[6].mxu0  ;;  %1027 = vmatprep.mubr.bf16.mxu1 %v468_v55 }
  0xf2   : > { %v417_v60 = vadd.f32 %v1002_v59, %v918_v40  ;;  %v408_v61 = vpop.f32.mrb[7].mxu0  ;;  %1028 = vmatmul.mubr.bf16.vlgmr.msra.gmra.mrb[0].mxu1 %v469_v53  ;;  %v458_v63 = vmax.f32 %v414_v56, 0.0 }
  0xf3   : > { %v409_v62 = vadd.f32 %v918_v40, %v408_v61  ;;  %v456_v1 = vmax.f32 %v406_v58, 0.0 }
  0xf4   : > { %v459_v0 = vmax.f32 %v417_v60, 0.0 }
  0xf5   : > { %v457_v2 = vmax.f32 %v409_v62, 0.0 }
  0xf6   : > { %v471_v3 = vpack.c.bf16 %v459_v0, %v458_v63 }
  0xf7   : > { %v470_v4 = vpack.c.bf16 %v457_v2, %v456_v1  ;;  %v1005_v5 = vpop.f32.mrb[8].mxu0 }
  0xf8   : > { %v430_v6 = vadd.f32 %v1005_v5, %v918_v40  ;;  %v421_v7 = vpop.f32.mrb[9].mxu0 }
  0xf9   : > { %v422_v8 = vadd.f32 %v918_v40, %v421_v7  ;;  %v1006_v9 = vpop.f32.mrb[10].mxu0  ;;  %1031 = vmatprep.mubr.bf16.mxu1 %v470_v4 }
  0xfa   : > { %v433_v10 = vadd.f32 %v1006_v9, %v918_v40  ;;  %v424_v11 = vpop.f32.mrb[11].mxu0  ;;  %1032 = vmatmul.mubr.bf16.gmra.mrb[4].mxu1 %v471_v3  ;;  %v462_v13 = vmax.f32 %v430_v6, 0.0 }
  0xfb   : > { %v425_v12 = vadd.f32 %v918_v40, %v424_v11  ;;  %v460_v15 = vmax.f32 %v422_v8, 0.0 }
  0xfc   : > { %v463_v14 = vmax.f32 %v433_v10, 0.0 }
  0xfd   : > { %v461_v16 = vmax.f32 %v425_v12, 0.0 }
  0xfe   : > { %v473_v17 = vpack.c.bf16 %v463_v14, %v462_v13 }
  0xff   : > { %v472_v18 = vpack.c.bf16 %v461_v16, %v460_v15  ;;  %v1009_v19 = vpop.f32.mrb[12].mxu0 }
 0x100   : > { %v446_v20 = vadd.f32 %v1009_v19, %v918_v40  ;;  %v437_v21 = vpop.f32.mrb[13].mxu0 }
 0x101   : > { %v438_v22 = vadd.f32 %v918_v40, %v437_v21  ;;  %v1010_v23 = vpop.f32.mrb[14].mxu0  ;;  %1035 = vmatprep.mubr.bf16.mxu1 %v472_v18 }
 0x102   : > { %v449_v24 = vadd.f32 %v1010_v23, %v918_v40  ;;  %v440_v25 = vpop.f32.mrb[15].mxu0  ;;  %1036 = vmatmul.mubr.bf16.gmra.mrb[8].mxu1 %v473_v17  ;;  %v466_v27 = vmax.f32 %v446_v20, 0.0 }
 0x103   : > { %v441_v26 = vadd.f32 %v918_v40, %v440_v25  ;;  %v464_v29 = vmax.f32 %v438_v22, 0.0 }
 0x104   : > { %v467_v28 = vmax.f32 %v449_v24, 0.0 }
 0x105   : > { %v465_v30 = vmax.f32 %v441_v26, 0.0 }
 0x106   : > { %v475_v31 = vpack.c.bf16 %v467_v28, %v466_v27  ;;  %v938_v28 = vld [vmem:[%s1302_s6] ss:$0 sm:$0xff] }
 0x107   : > { %v474_v32 = vpack.c.bf16 %v465_v30, %v464_v29 }
 0x109   : > { %1039 = vmatprep.mubr.bf16.mxu1 %v474_v32 }
 0x10a   : > { %1040 = vmatmul.mubr.bf16.gmra.mrb[12].mxu1 %v475_v31 }
 0x1c5   : > { %v1029_v36 = vpop.f32.mrb[0].mxu1 }
 0x1c6   : > { %v590_v37 = vadd.f32 %v1029_v36, %v929_v35  ;;  %v581_v38 = vpop.f32.mrb[1].mxu1 }
 0x1c7   : > { %v582_v39 = vadd.f32 %v929_v35, %v581_v38  ;;  %v1030_v40 = vpop.f32.mrb[2].mxu1 }
 0x1c8   : > { %v593_v41 = vadd.f32 %v1030_v40, %v929_v35  ;;  %v584_v42 = vpop.f32.mrb[3].mxu1  ;;  %v646_v44 = vmax.f32 %v590_v37, 0.0 }
 0x1c9   : > { %v585_v43 = vadd.f32 %v929_v35, %v584_v42  ;;  %v644_v46 = vmax.f32 %v582_v39, 0.0 }
 0x1ca   : > { %v647_v45 = vmax.f32 %v593_v41, 0.0 }
 0x1cb   : > { %v645_v47 = vmax.f32 %v585_v43, 0.0 }
 0x1cc   : > { %v661_v48 = vpack.c.bf16 %v647_v45, %v646_v44 }
 0x1cd   : > { %v660_v49 = vpack.c.bf16 %v645_v47, %v644_v46  ;;  %v1033_v50 = vpop.f32.mrb[4].mxu1 }
 0x1ce   : > { %v606_v51 = vadd.f32 %v1033_v50, %v929_v35  ;;  %v597_v52 = vpop.f32.mrb[5].mxu1 }
 0x1cf   : > { %v598_v53 = vadd.f32 %v929_v35, %v597_v52  ;;  %v1034_v54 = vpop.f32.mrb[6].mxu1  ;;  %1059 = vmatprep.mubr.bf16.mxu0 %v660_v49 }
 0x1d0   : > { %v609_v55 = vadd.f32 %v1034_v54, %v929_v35  ;;  %v600_v56 = vpop.f32.mrb[7].mxu1  ;;  %1060 = vmatmul.mubr.bf16.vlgmr.msra.gmra.mrb[16].mxu0 %v661_v48  ;;  %v650_v58 = vmax.f32 %v606_v51, 0.0 }
 0x1d1   : > { %v601_v57 = vadd.f32 %v929_v35, %v600_v56  ;;  %v648_v60 = vmax.f32 %v598_v53, 0.0 }
 0x1d2   : > { %v651_v59 = vmax.f32 %v609_v55, 0.0 }
 0x1d3   : > { %v649_v61 = vmax.f32 %v601_v57, 0.0 }
 0x1d4   : > { %v663_v62 = vpack.c.bf16 %v651_v59, %v650_v58 }
 0x1d5   : > { %v662_v63 = vpack.c.bf16 %v649_v61, %v648_v60  ;;  %v1037_v0 = vpop.f32.mrb[8].mxu1 }
 0x1d6   : > { %v622_v1 = vadd.f32 %v1037_v0, %v929_v35  ;;  %v613_v2 = vpop.f32.mrb[9].mxu1 }
 0x1d7   : > { %v614_v3 = vadd.f32 %v929_v35, %v613_v2  ;;  %v1038_v4 = vpop.f32.mrb[10].mxu1  ;;  %1063 = vmatprep.mubr.bf16.mxu0 %v662_v63 }
 0x1d8   : > { %v625_v5 = vadd.f32 %v1038_v4, %v929_v35  ;;  %v616_v6 = vpop.f32.mrb[11].mxu1  ;;  %1064 = vmatmul.mubr.bf16.gmra.mrb[20].mxu0 %v663_v62  ;;  %v654_v8 = vmax.f32 %v622_v1, 0.0 }
 0x1d9   : > { %v617_v7 = vadd.f32 %v929_v35, %v616_v6  ;;  %v652_v10 = vmax.f32 %v614_v3, 0.0 }
 0x1da   : > { %v655_v9 = vmax.f32 %v625_v5, 0.0 }
 0x1db   : > { %v653_v11 = vmax.f32 %v617_v7, 0.0 }
 0x1dc   : > { %v665_v12 = vpack.c.bf16 %v655_v9, %v654_v8 }
 0x1dd   : > { %v664_v13 = vpack.c.bf16 %v653_v11, %v652_v10  ;;  %v1041_v14 = vpop.f32.mrb[12].mxu1 }
 0x1de   : > { %v638_v15 = vadd.f32 %v1041_v14, %v929_v35  ;;  %v629_v16 = vpop.f32.mrb[13].mxu1 }
 0x1df   : > { %v630_v17 = vadd.f32 %v929_v35, %v629_v16  ;;  %v1042_v18 = vpop.f32.mrb[14].mxu1  ;;  %1067 = vmatprep.mubr.bf16.mxu0 %v664_v13 }
 0x1e0   : > { %v641_v19 = vadd.f32 %v1042_v18, %v929_v35  ;;  %v632_v20 = vpop.f32.mrb[15].mxu1  ;;  %1068 = vmatmul.mubr.bf16.gmra.mrb[24].mxu0 %v665_v12  ;;  %v658_v22 = vmax.f32 %v638_v15, 0.0 }
 0x1e1   : > { %v633_v21 = vadd.f32 %v929_v35, %v632_v20  ;;  %v656_v24 = vmax.f32 %v630_v17, 0.0 }
 0x1e2   : > { %v659_v23 = vmax.f32 %v641_v19, 0.0 }
 0x1e3   : > { %v657_v25 = vmax.f32 %v633_v21, 0.0 }
 0x1e4   : > { %v667_v26 = vpack.c.bf16 %v659_v23, %v658_v22 }
 0x1e5   : > { %v666_v27 = vpack.c.bf16 %v657_v25, %v656_v24 }
 0x1e7   : > { %1071 = vmatprep.mubr.bf16.mxu0 %v666_v27 }
 0x1e8   : > { %1072 = vmatmul.mubr.bf16.gmra.mrb[28].mxu0 %v667_v26 }
 0x2a3   : > { %v1061_v29 = vpop.f32.mrb[16].mxu0 }
 0x2a4   : > { %v782_v30 = vadd.f32 %v1061_v29, %v938_v28  ;;  %v773_v31 = vpop.f32.mrb[17].mxu0 }
 0x2a5   : > { %v774_v32 = vadd.f32 %v938_v28, %v773_v31  ;;  %v1062_v33 = vpop.f32.mrb[18].mxu0 }
 0x2a6   : > { %839 = vst.msk [vmem:[%s1259_s11 + $0x10] sm:$0xff] %vm836_vm1, %v782_v30  ;;  %v785_v34 = vadd.f32 %v1062_v33, %v938_v28  ;;  %v776_v35 = vpop.f32.mrb[19].mxu0 }
 0x2a7   : > { %837 = vst.msk [vmem:[%s1259_s11] sm:$0xff] %vm836_vm1, %v774_v32  ;;  %v777_v36 = vadd.f32 %v938_v28, %v776_v35 }
 0x2a8   : > { %840 = vst.msk [vmem:[%s1259_s11 + $0x18] sm:$0xff] %vm836_vm1, %v785_v34 }
 0x2a9   : > { %838 = vst.msk [vmem:[%s1259_s11 + $0x8] sm:$0xff] %vm836_vm1, %v777_v36 }
 0x2ab   : > { %v1065_v37 = vpop.f32.mrb[20].mxu0 }
 0x2ac   : > { %v798_v38 = vadd.f32 %v1065_v37, %v938_v28  ;;  %v789_v39 = vpop.f32.mrb[21].mxu0 }
 0x2ad   : > { %v790_v40 = vadd.f32 %v938_v28, %v789_v39  ;;  %v1066_v41 = vpop.f32.mrb[22].mxu0 }
 0x2ae   : > { %843 = vst.msk [vmem:[%s1259_s11 + $0x30] sm:$0xff] %vm836_vm1, %v798_v38  ;;  %v801_v42 = vadd.f32 %v1066_v41, %v938_v28  ;;  %v792_v43 = vpop.f32.mrb[23].mxu0 }
 0x2af   : > { %841 = vst.msk [vmem:[%s1259_s11 + $0x20] sm:$0xff] %vm836_vm1, %v790_v40  ;;  %v793_v44 = vadd.f32 %v938_v28, %v792_v43 }
 0x2b0   : > { %844 = vst.msk [vmem:[%s1259_s11 + $0x38] sm:$0xff] %vm836_vm1, %v801_v42 }
 0x2b1   : > { %842 = vst.msk [vmem:[%s1259_s11 + $0x28] sm:$0xff] %vm836_vm1, %v793_v44 }
 0x2b3   : > { %v1069_v45 = vpop.f32.mrb[24].mxu0 }
 0x2b4   : > { %v814_v46 = vadd.f32 %v1069_v45, %v938_v28  ;;  %v805_v47 = vpop.f32.mrb[25].mxu0 }
 0x2b5   : > { %v806_v48 = vadd.f32 %v938_v28, %v805_v47  ;;  %v1070_v49 = vpop.f32.mrb[26].mxu0 }
 0x2b6   : > { %847 = vst.msk [vmem:[%s1259_s11 + $0x50] sm:$0xff] %vm836_vm1, %v814_v46  ;;  %v817_v50 = vadd.f32 %v1070_v49, %v938_v28  ;;  %v808_v51 = vpop.f32.mrb[27].mxu0 }
 0x2b7   : > { %845 = vst.msk [vmem:[%s1259_s11 + $0x40] sm:$0xff] %vm836_vm1, %v806_v48  ;;  %v809_v52 = vadd.f32 %v938_v28, %v808_v51 }
 0x2b8   : > { %848 = vst.msk [vmem:[%s1259_s11 + $0x58] sm:$0xff] %vm836_vm1, %v817_v50 }
 0x2b9   : > { %846 = vst.msk [vmem:[%s1259_s11 + $0x48] sm:$0xff] %vm836_vm1, %v809_v52 }
 0x2bb   : > { %v1073_v53 = vpop.f32.mrb[28].mxu0 }
 0x2bc   : > { %v830_v54 = vadd.f32 %v1073_v53, %v938_v28  ;;  %v821_v55 = vpop.f32.mrb[29].mxu0 }
 0x2bd   : > { %v822_v56 = vadd.f32 %v938_v28, %v821_v55  ;;  %v1074_v57 = vpop.f32.mrb[30].mxu0 }
 0x2be   : > { %851 = vst.msk [vmem:[%s1259_s11 + $0x70] sm:$0xff] %vm836_vm1, %v830_v54  ;;  %v833_v58 = vadd.f32 %v1074_v57, %v938_v28  ;;  %v824_v59 = vpop.f32.mrb[31].mxu0 }
 0x2bf   : > { %849 = vst.msk [vmem:[%s1259_s11 + $0x60] sm:$0xff] %vm836_vm1, %v822_v56  ;;  %v825_v60 = vadd.f32 %v938_v28, %v824_v59 }
 0x2c0   : > { %852 = vst.msk [vmem:[%s1259_s11 + $0x78] sm:$0xff] %vm836_vm1, %v833_v58 }
 0x2c1   : > { %850 = vst.msk [vmem:[%s1259_s11 + $0x68] sm:$0xff] %vm836_vm1, %v825_v60 }
 0x2c2 PF: > { %s17_s24 = sadd.s32 1, %s1107_s24  }
 0x2c3   : > { %p14_p4 = scmp.ge.s32.totalorder %s17_s24, 4  }
 0x2c5   :  { %16 = sbr.rel (!%p14_p4) target bundleno = 1 (0x1), region = 78 }

</bundles_post_ra>
